<compile_context>
chip_gen: v5e
topology: v5e:2x2
jax: 0.10.0
libtpu: 0.0.40
codegen_flags: <defaults>
</compile_context>

<pallas_src>
import math
from functools import partial

import jax
import jax.numpy as jnp
from jax.experimental import pallas as pl
from jax.experimental.pallas import tpu as pltpu


VMEM_SPEC = pl.BlockSpec(memory_space=pltpu.MemorySpace.VMEM)
VMEM_LIMIT = 32 * 1024 * 1024  # fits default scoped limits on v5e/v6e/v7x


def _sd(shape, dtype=jnp.float32):
    return jax.ShapeDtypeStruct(shape, dtype)


def _cparams(*sem):
    return pltpu.CompilerParams(
        dimension_semantics=tuple(sem),
        vmem_limit_bytes=VMEM_LIMIT,
    )


def _token_tile(n):
    """Largest token-tile (multiple of 8) that divides n; else full extent."""
    for t in (512, 256, 128, 64, 32, 16, 8):
        if n % t == 0:
            return t
    return n


# ----------------------------- Pallas kernels ------------------------------ #

def layernorm_kernel(x_ref, g_ref, b_ref, o_ref):
    # x: (TM, H)   g, b: (1, H)  — LayerNorm statistics in f32.
    x = x_ref[...].astype(jnp.float32)
    mu = jnp.mean(x, axis=-1, keepdims=True)
    var = jnp.mean((x - mu) ** 2, axis=-1, keepdims=True)
    y = (x - mu) * jax.lax.rsqrt(var + 1e-12)
    o_ref[...] = (y * g_ref[...] + b_ref[...]).astype(o_ref.dtype)


def attn_block_kernel(x_ref, bias_ref, wqkv_ref, bqkv_ref, wo_ref, bo_ref,
                      g_ref, b_ref, o_ref, *, num_heads, head_dim, scale):
    # x: (1, S, H) bf16,  bias: (1, 1, S) f32 additive key mask,
    # wqkv: (H, 3H) bf16, bqkv: (1, 3H) f32, wo: (H, H) bf16, bo/g/b: (1, H) f32.
    H = num_heads * head_dim
    x = x_ref[0]                                   # (S, H) bf16
    bias = bias_ref[0]                             # (1, S) f32

    # Fused QKV projection: x read once, MXU sees a 3H-wide N dim.
    qkv = jnp.dot(x, wqkv_ref[...],
                  preferred_element_type=jnp.float32) + bqkv_ref[...]
    qkv = qkv.astype(jnp.bfloat16)                 # (S, 3H)

    # Per-head attention; heads are static lane slices (no HBM transposes).
    ctx_heads = []
    for h in range(num_heads):
        q = qkv[:, h * head_dim:(h + 1) * head_dim]
        k = qkv[:, H + h * head_dim:H + (h + 1) * head_dim]
        v = qkv[:, 2 * H + h * head_dim:2 * H + (h + 1) * head_dim]
        # q @ k^T via dot_general (contract on last dims) — no explicit transpose.
        s = jax.lax.dot_general(q, k, (((1,), (1,)), ((), ())),
                                preferred_element_type=jnp.float32)
        s = s * scale + bias                       # (S, S) f32
        m = jnp.max(s, axis=-1, keepdims=True)
        p = jnp.exp(s - m)
        denom = jnp.sum(p, axis=-1, keepdims=True)
        p = p * pl.reciprocal(denom, approx=True)  # EUP slot, co-issues free
        ctx_heads.append(jnp.dot(p.astype(jnp.bfloat16), v,
                                 preferred_element_type=jnp.float32))
    ctx = jnp.concatenate(ctx_heads, axis=-1).astype(jnp.bfloat16)   # (S, H)

    # Output projection + residual + LayerNorm (f32 math).
    attn_out = jnp.dot(ctx, wo_ref[...],
                       preferred_element_type=jnp.float32) + bo_ref[...]
    y = attn_out + x.astype(jnp.float32)
    mu = jnp.mean(y, axis=-1, keepdims=True)
    var = jnp.mean((y - mu) ** 2, axis=-1, keepdims=True)
    y = (y - mu) * jax.lax.rsqrt(var + 1e-12)
    o_ref[0] = (y * g_ref[...] + b_ref[...]).astype(o_ref.dtype)


def ffn_block_kernel(x_ref, w1_ref, b1_ref, w2_ref, b2_ref, g_ref, b_ref, o_ref):
    # x: (TM, H) bf16, w1: (H, I) bf16, w2: (I, H) bf16, biases/ln in f32.
    x = x_ref[...]
    h = jnp.dot(x, w1_ref[...], preferred_element_type=jnp.float32) + b1_ref[...]
    # TODO(synk): BERT uses exact erf-GELU; tanh approximation used here.
    h = jax.nn.gelu(h, approximate=True)
    o = jnp.dot(h.astype(jnp.bfloat16), w2_ref[...],
                preferred_element_type=jnp.float32) + b2_ref[...]
    y = o + x.astype(jnp.float32)
    mu = jnp.mean(y, axis=-1, keepdims=True)
    var = jnp.mean((y - mu) ** 2, axis=-1, keepdims=True)
    y = (y - mu) * jax.lax.rsqrt(var + 1e-12)
    o_ref[...] = (y * g_ref[...] + b_ref[...]).astype(o_ref.dtype)


def zhead_kernel(x_ref, wz_ref, mask_ref, probs_ref, pred_ref):
    # x: (B, S, H) bf16, wz: (1, H) f32, mask: (B, S) f32.
    # Logits as VPU multiply + lane reduction (no N=1 MXU matmul); outputs are
    # lane-dense (B, S) slabs.
    x = x_ref[...].astype(jnp.float32)
    wz = wz_ref[...].astype(jnp.float32)           # (1, H)
    logits = jnp.sum(x * wz[None, :, :], axis=-1)  # (B, S)
    probs = jax.nn.sigmoid(logits)
    mask = mask_ref[...]
    probs_ref[...] = probs * mask
    pred_ref[...] = (probs > 0.5).astype(jnp.int32) * mask.astype(jnp.int32)


# -------------------------- pallas_call wrappers --------------------------- #

def layernorm_tokens(x, g, b):
    N, H = x.shape
    tm = _token_tile(N)
    return pl.pallas_call(
        layernorm_kernel,
        out_shape=_sd((N, H), jnp.bfloat16),
        grid=(N // tm,),
        in_specs=[
            pl.BlockSpec((tm, H), lambda i: (i, 0)),
            pl.BlockSpec((1, H), lambda i: (0, 0)),
            pl.BlockSpec((1, H), lambda i: (0, 0)),
        ],
        out_specs=pl.BlockSpec((tm, H), lambda i: (i, 0)),
        compiler_params=_cparams("parallel"),
    )(x, g, b)


def attention_block(x3, bias, layer, cfg):
    B, S, H = x3.shape
    nH = cfg['heads']
    Dh = H // nH
    kernel = partial(attn_block_kernel, num_heads=nH, head_dim=Dh,
                     scale=1.0 / math.sqrt(Dh))

    def full2(shape):
        return pl.BlockSpec(shape, lambda b: (0, 0))

    return pl.pallas_call(
        kernel,
        out_shape=_sd((B, S, H), jnp.bfloat16),
        grid=(B,),
        in_specs=[
            pl.BlockSpec((1, S, H), lambda b: (b, 0, 0)),   # x
            pl.BlockSpec((1, 1, S), lambda b: (b, 0, 0)),   # additive key bias
            full2((H, 3 * H)), full2((1, 3 * H)),           # wqkv, bqkv
            full2((H, H)), full2((1, H)),                   # wo, bo
            full2((1, H)), full2((1, H)),                   # ln1 gamma, beta
        ],
        out_specs=pl.BlockSpec((1, S, H), lambda b: (b, 0, 0)),
        compiler_params=_cparams("parallel"),
    )(x3, bias, layer['wqkv'], layer['bqkv'], layer['wo'], layer['bo'],
      layer['ln1_g'], layer['ln1_b'])


def ffn_block(x, layer, cfg):
    N, H = x.shape
    I = cfg['intermediate']
    tm = _token_tile(N)

    def full(shape):
        return pl.BlockSpec(shape, lambda i: (0, 0))

    return pl.pallas_call(
        ffn_block_kernel,
        out_shape=_sd((N, H), jnp.bfloat16),
        grid=(N // tm,),
        in_specs=[
            pl.BlockSpec((tm, H), lambda i: (i, 0)),
            full((H, I)), full((1, I)),
            full((I, H)), full((1, H)),
            full((1, H)), full((1, H)),
        ],
        out_specs=pl.BlockSpec((tm, H), lambda i: (i, 0)),
        compiler_params=_cparams("parallel"),
    )(x, layer['w1'], layer['b1'], layer['w2'], layer['b2'],
      layer['ln2_g'], layer['ln2_b'])


def z_head(x3, wz, mask):
    B, S, H = x3.shape
    return pl.pallas_call(
        zhead_kernel,
        out_shape=(_sd((B, S), jnp.float32), _sd((B, S), jnp.int32)),
        in_specs=[VMEM_SPEC, VMEM_SPEC, VMEM_SPEC],
        out_specs=(VMEM_SPEC, VMEM_SPEC),
        compiler_params=pltpu.CompilerParams(vmem_limit_bytes=VMEM_LIMIT),
    )(x3, wz, mask)


# --------------------------- parameter construction ------------------------- #

def init_params(key, cfg):
    H, I = cfg['hidden'], cfg['intermediate']
    n_keys = 3 + 4 * cfg['layers'] + 1
    keys = iter(jax.random.split(key, n_keys))

    def nrm(shape, dtype=jnp.bfloat16, scale=0.02):
        return (scale * jax.random.normal(next(keys), shape, jnp.float32)).astype(dtype)

    params = {
        'word_emb': nrm((cfg['vocab'], H), jnp.float32),
        'pos_emb': nrm((cfg['max_pos'], H), jnp.float32),
        'type_emb': nrm((cfg['type_vocab'], H), jnp.float32),
        'emb_ln_g': jnp.ones((1, H), jnp.float32),
        'emb_ln_b': jnp.zeros((1, H), jnp.float32),
        'layers': [],
    }
    for _ in range(cfg['layers']):
        params['layers'].append({
            'wqkv': nrm((H, 3 * H)), 'bqkv': jnp.zeros((1, 3 * H), jnp.float32),
            'wo': nrm((H, H)), 'bo': jnp.zeros((1, H), jnp.float32),
            'ln1_g': jnp.ones((1, H), jnp.float32),
            'ln1_b': jnp.zeros((1, H), jnp.float32),
            'w1': nrm((H, I)), 'b1': jnp.zeros((1, I), jnp.float32),
            'w2': nrm((I, H)), 'b2': jnp.zeros((1, H), jnp.float32),
            'ln2_g': jnp.ones((1, H), jnp.float32),
            'ln2_b': jnp.zeros((1, H), jnp.float32),
        })
    # z_layer: Linear(hidden, 1, bias=False), xavier-uniform init (stored (1, H)).
    bound = math.sqrt(6.0 / (H + 1))
    params['wz'] = jax.random.uniform(next(keys), (1, H), jnp.float32,
                                      minval=-bound, maxval=bound)
    return params


# ------------------------------- forward pass ------------------------------- #

def generator_forward(params, sentences, attention_mask, token_type_ids, cfg):
    B, S = sentences.shape
    H = cfg['hidden']

    # Embeddings (gather = JAX glue) + Pallas LayerNorm (token-tiled).
    emb = (jnp.take(params['word_emb'], sentences, axis=0)
           + params['pos_emb'][None, :S, :]
           + jnp.take(params['type_emb'], token_type_ids, axis=0)).astype(jnp.float32)
    x = layernorm_tokens(emb.reshape(B * S, H),
                         params['emb_ln_g'], params['emb_ln_b'])   # (B*S, H) bf16

    # BERT-style extended attention mask bias, kept in f32.
    bias = ((1.0 - attention_mask.astype(jnp.float32)) * -1e9).reshape(B, 1, S)

    for layer in params['layers']:
        # Fused attention block (QKV + attention + out-proj + add/LN).
        x3 = attention_block(x.reshape(B, S, H), bias, layer, cfg)
        # Fused FFN block (W1 + GELU + W2 + add/LN), token-tiled.
        x = ffn_block(x3.reshape(B * S, H), layer, cfg)

    # z_layer + sigmoid + masking head (lane-dense (B, S) outputs).
    mask = (sentences != 0).astype(jnp.float32)
    probs, pred = z_head(x.reshape(B, S, H), params['wz'], mask)

    return {
        'probs': probs,
        'mask': mask,
        'predicted_rationale': pred,
        'prob_z': probs,
    }


# ---------------------------------- main ------------------------------------ #

if __name__ == "__main__":
    cfg = dict(vocab=100, hidden=32, layers=2, heads=4, intermediate=64,
               max_pos=32, type_vocab=2)
    B, S = 2, 8

    key = jax.random.PRNGKey(0)
    k_par, k_tok = jax.random.split(key)
    params = init_params(k_par, cfg)

    sentences = jax.random.randint(k_tok, (B, S), 1, cfg['vocab'], dtype=jnp.int32)
    # Explicit padding (token id 0) to exercise the mask path.
    sentences = sentences.at[0, -2:].set(0)
    attention_mask = (sentences != 0).astype(jnp.int32)
    token_type_ids = jnp.zeros((B, S), jnp.int32)

    out = generator_forward(params, sentences, attention_mask, token_type_ids, cfg)
    jax.block_until_ready(out)

    assert out['probs'].shape == (B, S)
    assert out['mask'].shape == (B, S)
    assert out['predicted_rationale'].shape == (B, S)
    assert out['prob_z'].shape == (B, S)
    assert out['probs'].dtype == jnp.float32
    assert out['predicted_rationale'].dtype == jnp.int32
    print("KERNEL_OK")
</pallas_src>

<mosaic_0001>
module attributes {stable_mosaic.version = 11 : i64} {
  func.func @layernorm_kernel(%arg0: i32, %arg1: memref<16x32xf32, #tpu.memory_space<vmem>>, %arg2: memref<1x32xf32, #tpu.memory_space<vmem>>, %arg3: memref<1x32xf32, #tpu.memory_space<vmem>>, %arg4: memref<16x32xbf16, #tpu.memory_space<vmem>>) attributes {dimension_semantics = [#tpu.dimension_semantics<parallel>], iteration_bounds = array<i64: 1>, scalar_prefetch = 0 : i64, scratch_operands = 0 : i64, tpu.core_type = #tpu.core_type<tc>, window_params = [{transform_indices = @transform_0, window_bounds = array<i64: 16, 32>}, {pipeline_mode = #tpu.pipeline_mode<synchronous>, transform_indices = @transform_1, window_bounds = array<i64: 1, 32>}, {pipeline_mode = #tpu.pipeline_mode<synchronous>, transform_indices = @transform_2, window_bounds = array<i64: 1, 32>}, {transform_indices = @transform_3, window_bounds = array<i64: 16, 32>}]} {
    %c0 = arith.constant 0 : index
    %c0_0 = arith.constant 0 : index
    %0 = vector.load %arg1[%c0, %c0_0] : memref<16x32xf32, #tpu.memory_space<vmem>>, vector<16x32xf32>
    %cst = arith.constant dense<0.000000e+00> : vector<16xf32>
    %1 = vector.multi_reduction <add>, %0, %cst [1] : vector<16x32xf32> to vector<16xf32>
    %2 = vector.shape_cast %1 : vector<16xf32> to vector<16x1xf32>
    %cst_1 = arith.constant 3.200000e+01 : f32
    %3 = vector.broadcast %cst_1 : f32 to vector<16x1xf32>
    %4 = arith.divf %2, %3 : vector<16x1xf32>
    %5 = vector.broadcast %4 : vector<16x1xf32> to vector<16x32xf32>
    %6 = arith.subf %0, %5 : vector<16x32xf32>
    %7 = arith.mulf %6, %6 : vector<16x32xf32>
    %cst_2 = arith.constant dense<0.000000e+00> : vector<16xf32>
    %8 = vector.multi_reduction <add>, %7, %cst_2 [1] : vector<16x32xf32> to vector<16xf32>
    %9 = vector.shape_cast %8 : vector<16xf32> to vector<16x1xf32>
    %cst_3 = arith.constant 3.200000e+01 : f32
    %10 = vector.broadcast %cst_3 : f32 to vector<16x1xf32>
    %11 = arith.divf %9, %10 : vector<16x1xf32>
    %12 = vector.broadcast %4 : vector<16x1xf32> to vector<16x32xf32>
    %13 = arith.subf %0, %12 : vector<16x32xf32>
    %cst_4 = arith.constant 9.99999996E-13 : f32
    %14 = vector.broadcast %cst_4 : f32 to vector<16x1xf32>
    %15 = arith.addf %11, %14 : vector<16x1xf32>
    %16 = math.rsqrt %15 : vector<16x1xf32>
    %17 = vector.broadcast %16 : vector<16x1xf32> to vector<16x32xf32>
    %18 = arith.mulf %13, %17 : vector<16x32xf32>
    %c0_5 = arith.constant 0 : index
    %c0_6 = arith.constant 0 : index
    %19 = vector.load %arg2[%c0_5, %c0_6] : memref<1x32xf32, #tpu.memory_space<vmem>>, vector<1x32xf32>
    %20 = vector.broadcast %19 : vector<1x32xf32> to vector<16x32xf32>
    %21 = arith.mulf %18, %20 : vector<16x32xf32>
    %c0_7 = arith.constant 0 : index
    %c0_8 = arith.constant 0 : index
    %22 = vector.load %arg3[%c0_7, %c0_8] : memref<1x32xf32, #tpu.memory_space<vmem>>, vector<1x32xf32>
    %23 = vector.broadcast %22 : vector<1x32xf32> to vector<16x32xf32>
    %24 = arith.addf %21, %23 : vector<16x32xf32>
    %25 = arith.truncf %24 : vector<16x32xf32> to vector<16x32xbf16>
    %c0_9 = arith.constant 0 : index
    %c0_10 = arith.constant 0 : index
    %26 = vector.load %arg4[%c0_9, %c0_10] : memref<16x32xbf16, #tpu.memory_space<vmem>>, vector<16x32xbf16>
    tpu.vector_store %arg4[%c0_9, %c0_10], %25 {strides = array<i32>} : memref<16x32xbf16, #tpu.memory_space<vmem>>, vector<16x32xbf16>,
    return
  }
  func.func @transform_0(%arg0: i32) -> (i32, i32) {
    %c0_i32 = arith.constant 0 : i32
    %c0_i32_0 = arith.constant 0 : i32
    return %arg0, %c0_i32 : i32, i32
  }
  func.func @transform_1(%arg0: i32) -> (i32, i32) {
    %c0_i32 = arith.constant 0 : i32
    %c0_i32_0 = arith.constant 0 : i32
    %c0_i32_1 = arith.constant 0 : i32
    return %c0_i32, %c0_i32_0 : i32, i32
  }
  func.func @transform_2(%arg0: i32) -> (i32, i32) {
    %c0_i32 = arith.constant 0 : i32
    %c0_i32_0 = arith.constant 0 : i32
    %c0_i32_1 = arith.constant 0 : i32
    return %c0_i32, %c0_i32_0 : i32, i32
  }
  func.func @transform_3(%arg0: i32) -> (i32, i32) {
    %c0_i32 = arith.constant 0 : i32
    %c0_i32_0 = arith.constant 0 : i32
    return %arg0, %c0_i32 : i32, i32
  }
}

</mosaic_0001>

<bundles_post_ra>
// kernel: tpu_custom_call.1
= control target key start
LH: loop header
LB: loop body
LE: loop exit
PB: predicated region body
PF: predicated region fallthrough
CT: control target
= control target key end

     0   :  { %8 = vsyncpa [#allocation3], 0  ;;  %s274_s0 = inlined_call_operand.hbm [shape: f32[16,32], index: 0, kind: input, shape index: {}]   ;;  %s275_s1 = inlined_call_operand.hbm [shape: f32[1,32], index: 1, kind: input, shape index: {}]   ;;  %s276_s2 = inlined_call_operand.vmem [shape: f32[1,32], index: 2, kind: input, shape index: {}]   ;;  %s277_s3 = inlined_call_operand.hbm [shape: bf16[16,32], index: 3, kind: output, shape index: {}]  }
   0x1   :  { %9 = vsyncpa [#allocation6], 0 }
   0x2   :  { %10 = vsyncpa [#allocation4], 0  ;;  %s15_s14 = sshll.u32 %s274_s0, 4  ;;  %s230_s15 = smov [#allocation2]   ;;  %s16_s14 = int_to_ptr.hbm [resolvable:$true] %s15_s14 }
   0x3   :  { %s17_s16 = sshll.u32 %s230_s15, 4  ;;  %s29_s19 = sshll.u32 %s275_s1, 4  ;;  %s18_s16 = int_to_ptr.vmem [resolvable:$true] %s17_s16  ;;  %s30_s19 = int_to_ptr.hbm [resolvable:$true] %s29_s19 }
   0x4   :  { %s231_s20 = smov 128   ;;  %s232_s21 = smov 8  }
   0x5   :  { %23 = dma.hbm_to_vmem [thread:$0]  %s16_s14, 256, %s18_s16, [#allocation3], %s231_s20, %s231_s20, %s232_s21  }
   0x6   :  { %s233_s22 = smov [#allocation5]  }
   0x7   :  { %s31_s23 = sshll.u32 %s233_s22, 4  ;;  %s32_s23 = int_to_ptr.vmem [resolvable:$true] %s31_s23 }
   0x8   :  { %34 = dma.hbm_to_vmem [thread:$0]  %s30_s19, 16, %s32_s23, [#allocation6]  }
   0x9   :  { %224 = dma.done.wait [#allocation3], 256  }
   0xa   :  { %225 = vsyncadd [#allocation3], 4294967040 }
   0xb   :  { %226 = dma.done.wait [#allocation6], 16  }
   0xc   :  { %227 = vsyncadd [#allocation6], 4294967280  ;;  %vm47_vm0 = vcmask 261120   ;;  %v45_v0 = vld [vmem:[#allocation2] sm:$0xff]  ;;  %v46_v2 = vld [vmem:[#allocation2 + $0x8] sm:$0xff]  ;;  %v234_v4 = vmov 32.0  }
   0xd   :  { %v48_v1 = vsel %vm47_vm0, %v45_v0, 0.0  ;;  %v51_v3 = vsel %vm47_vm0, %v46_v2, 0.0  ;;  %146 = vrcp.f32 %v234_v4  ;;  %v144_v35 = vld [vmem:[#allocation5] ss:$0 sm:$0xff]  ;;  %v145_v38 = vld [vmem:[%s276_s2] ss:$0 sm:$0xff] }
   0xe   :  { %49 = vadd.xlane.f32.xlu0 %v48_v1  ;;  %vm113_vm7 = vcmask 257024   ;;  %s235_s24 = smov [#allocation7]   ;;  %s122_s2 = sshll.u32 %s277_s3, 4  ;;  %s123_s2 = int_to_ptr.hbm [resolvable:$true] %s122_s2 }
   0xf   :  { %s120_s25 = sshll.u32 %s235_s24, 4  ;;  %s236_s28 = smov 64   ;;  %s121_s25 = int_to_ptr.vmem [resolvable:$true] %s120_s25 }
  0x10   :  { %s237_s29 = smov 4  }
  0x13   :  { %v147_v5 = vpop.eup %146 }
  0x14   :  { %v55_v6 = vmul.f32 32.0, %v147_v5  ;;  %vm59_vm1 = vweird.f32 %v147_v5 }
  0x16   :  { %52 = vadd.xlane.f32.xlu0 %v51_v3  ;;  %v56_v7 = vsub.f32 1.0, %v55_v6 }
  0x18   :  { %v57_v8 = vmul.f32 %v147_v5, %v56_v7 }
  0x1a   :  { %v58_v9 = vadd.f32 %v147_v5, %v57_v8 }
  0x1c   :  { %v60_v10 = vsel %vm59_vm1, %v147_v5, %v58_v9 }
  0x81   :  { %v50_v11 = vpop.xlane.xlu0 %49 }
  0x82   :  { %v61_v12 = vmul.f32 %v60_v10, %v50_v11 }
  0x84   :  { %v63_v13 = vsub.f32 %v45_v0, %v61_v12 }
  0x86   :  { %v65_v14 = vmul.f32 %v63_v13, %v63_v13 }
  0x88   :  { %v67_v15 = vsel %vm47_vm0, %v65_v14, 0.0 }
  0x89   :  { %68 = vadd.xlane.f32.xlu1 %v67_v15  ;;  %v53_v16 = vpop.xlane.xlu0 %52 }
  0x8a   :  { %v62_v17 = vmul.f32 %v60_v10, %v53_v16 }
  0x8c   :  { %v64_v18 = vsub.f32 %v46_v2, %v62_v17 }
  0x8e   :  { %v66_v19 = vmul.f32 %v64_v18, %v64_v18 }
  0x90   :  { %v70_v20 = vsel %vm47_vm0, %v66_v19, 0.0 }
  0x91   :  { %71 = vadd.xlane.f32.xlu1 %v70_v20 }
  0xfc   :  { %v69_v21 = vpop.xlane.xlu1 %68 }
  0xfd   :  { %v73_v22 = vmul.f32 %v69_v21, %v60_v10 }
  0xff   :  { %v75_v23 = vadd.f32 1e-12, %v73_v22 }
 0x101   :  { %148 = vrsqrt.f32 %v75_v23  ;;  %vm83_vm3 = vweird.f32 %v75_v23 }
 0x104   :  { %v72_v24 = vpop.xlane.xlu1 %71 }
 0x105   :  { %v74_v25 = vmul.f32 %v72_v24, %v60_v10 }
 0x107   :  { %v149_v26 = vpop.eup %148  ;;  %v76_v27 = vadd.f32 1e-12, %v74_v25 }
 0x108   :  { %v78_v28 = vmul.f32 %v149_v26, %v75_v23  ;;  %vm84_vm2 = vweird.f32 %v149_v26 }
 0x109   :  { %150 = vrsqrt.f32 %v76_v27  ;;  %vm85_vm4 = vmor %vm83_vm3, %vm84_vm2  ;;  %vm93_vm6 = vweird.f32 %v76_v27 }
 0x10a   :  { %v79_v29 = vmul.f32 %v149_v26, %v78_v28 }
 0x10c   :  { %v80_v30 = vmul.f32 0.5, %v79_v29 }
 0x10e   :  { %v81_v31 = vsub.f32 1.5, %v80_v30 }
 0x10f   :  { %v151_v32 = vpop.eup %150 }
 0x110   :  { %v82_v33 = vmul.f32 %v149_v26, %v81_v31  ;;  %v88_v34 = vmul.f32 %v151_v32, %v76_v27  ;;  %vm94_vm5 = vweird.f32 %v151_v32 }
 0x111   :  { %vm95_vm8 = vmor %vm93_vm6, %vm94_vm5 }
 0x112   :  { %v86_v36 = vsel %vm85_vm4, %v149_v26, %v82_v33  ;;  %v89_v37 = vmul.f32 %v151_v32, %v88_v34 }
 0x113   :  { %v97_v39 = vmul.f32 %v86_v36, %v63_v13 }
 0x114   :  { %v90_v40 = vmul.f32 0.5, %v89_v37 }
 0x115   :  { %v103_v41 = vmul.f32 %v144_v35, %v97_v39 }
 0x116   :  { %v91_v42 = vsub.f32 1.5, %v90_v40 }
 0x117   :  { %v109_v43 = vadd.f32 %v145_v38, %v103_v41 }
 0x118   :  { %v92_v44 = vmul.f32 %v151_v32, %v91_v42 }
 0x119   :  { %v111_v45 = vpack.c.bf16 %v109_v43, %v109_v43 }
 0x11a   :  { %v96_v46 = vsel %vm95_vm8, %v151_v32, %v92_v44 }
 0x11b   :  { %v98_v47 = vmul.f32 %v96_v46, %v64_v18  ;;  %114 = vst.msk [vmem:[#allocation7] sm:$0xf] %vm113_vm7, %v111_v45 }
 0x11d   :  { %v104_v48 = vmul.f32 %v144_v35, %v98_v47 }
 0x11f   :  { %v110_v49 = vadd.f32 %v145_v38, %v104_v48 }
 0x121   :  { %v112_v50 = vpack.c.bf16 %v110_v49, %v110_v49 }
 0x123   :  { %115 = vst.msk [vmem:[#allocation7 + $0x4] sm:$0xf] %vm113_vm7, %v112_v50 }
 0x124   :  { %128 = dma.vmem_to_hbm [thread:$0]  %s121_s25, 128, %s123_s2, [#allocation4], %s236_s28, %s236_s28, %s237_s29  }
 0x125   :  { %228 = dma.done.wait [#allocation4], 128  }
 0x126   :  { %229 = vsyncadd [#allocation4], 4294967168 }
 0x127   :  { %133 = vsyncpa [#allocation3], 1 }
 0x128   :  { %134 = vsyncpa [#allocation6], 1 }
 0x129   :  { %135 = vsyncpa [#allocation4], 1 }

</bundles_post_ra>
